<compile_context>
chip_gen: v6e
topology: v6e:2x2x1
jax: 0.10.0
libtpu: 0.0.40
codegen_flags: <defaults>
</compile_context>

<pallas_src>
import math

import jax
import jax.numpy as jnp
from jax.experimental import pallas as pl
from jax.experimental.pallas import tpu as pltpu

_LANE = 128
_MIN_TILE = 512                       # lanes; below this HBM roofline util drops
_MAX_TILE = 2048                      # lanes; ~3 MiB X block at N=2, C=192, f32
_VMEM_LIMIT = 32 * 1024 * 1024        # comfortably below v7x's 64 MiB per-TC VMEM


def _pick_spatial_tile(s):
    """Choose (tile, num_tiles) for the flattened spatial axis.

    Prefers tiles that (a) divide S exactly (no wrapper padding, no ragged
    block), (b) are lane multiples in the 512-2048 sweet spot, and (c) give
    >= 4 grid steps so both DMA/compute overlap and (on v7x) cross-TensorCore
    sharding of the parallel axis are possible."""
    max_t = min(_MAX_TILE, s)
    lane_divs = [d for d in range(_LANE, max_t + 1, _LANE) if s % d == 0]
    if lane_divs:
        for d in sorted(lane_divs, reverse=True):
            if s // d >= 4 and d >= _MIN_TILE:
                return d, s // d
        for d in sorted(lane_divs, reverse=True):
            if s // d >= 2:                      # at least enables double-buffer overlap
                return d, s // d
        d = max(lane_divs)
        return d, s // d
    if s <= _MAX_TILE:
        # No lane-multiple divisor but S is small: single full-extent block
        # (block_shape == full array dim is always legal) -> zero padding.
        return s, 1
    # Large, awkward S: lane-multiple tile with a ragged final block.  Pallas
    # masks out-of-range output columns; out-of-range input lanes only feed
    # those masked columns, so no wrapper-side jnp.pad (extra HBM pass) needed.
    return _MAX_TILE, -(-s // _MAX_TILE)


def fuse_kernel(w_ref, b_ref, x_ref, o_ref):
    # w_ref: (1, C) VMEM (resident)   b_ref: (1, 1) SMEM scalar
    # x_ref: (N, C, tS) VMEM tile     o_ref: (N, tS) VMEM tile
    w = w_ref[...]                                   # (1, C)
    b = b_ref[0, 0]                                  # scalar
    n_batch = x_ref.shape[0]
    # N is tiny (2) -> static unroll with direct per-row stores (no concatenate,
    # no sublane relayout).  TODO(synk): switch to lax.fori_loop if N grows.
    for n in range(n_batch):
        row = jnp.dot(w, x_ref[n], preferred_element_type=jnp.float32)  # (1, tS)
        o_ref[pl.ds(n, 1), :] = row + b              # lane-dense store of one row


def fusenet_forward(x, weight, bias):
    """x: (N, C, D, H, W); weight: (1, C, 1, 1, 1); bias: (1,). Returns (N,1,D,H,W) f32."""
    N, C, D, H, W = x.shape
    S = D * H * W

    xf = x.reshape(N, C, S)                          # free reshape, native dtype stream
    w2d = weight.reshape(1, C).astype(jnp.float32)   # tiny; keep f32 weights/bias
    b2d = bias.reshape(1, 1).astype(jnp.float32)

    tS, num_tiles = _pick_spatial_tile(S)

    x_spec = pl.BlockSpec((N, C, tS), lambda t: (0, 0, t))
    if num_tiles >= 4:
        # Enough steps for a deeper pipeline on the streamed input.
        x_spec = pl.BlockSpec((N, C, tS), lambda t: (0, 0, t),
                              pipeline_mode=pl.Buffered(3))

    bytes_accessed = (xf.dtype.itemsize * N * C * S   # X stream
                      + 4 * N * S                     # output
                      + 4 * C + 4)                    # weight + bias
    cost = pl.CostEstimate(flops=2 * N * C * S, transcendentals=0,
                           bytes_accessed=bytes_accessed)

    out = pl.pallas_call(
        fuse_kernel,
        out_shape=jax.ShapeDtypeStruct((N, S), jnp.float32),
        grid=(num_tiles,),
        in_specs=[
            pl.BlockSpec((1, C), lambda t: (0, 0)),               # weight (resident)
            pl.BlockSpec(memory_space=pltpu.MemorySpace.SMEM),    # bias scalar
            x_spec,                                               # X spatial tile
        ],
        out_specs=pl.BlockSpec((N, tS), lambda t: (0, t)),
        compiler_params=pltpu.CompilerParams(
            # "parallel" lets the runtime shard the spatial steps across
            # TensorCores on multi-TC parts (v7x); harmless elsewhere.
            dimension_semantics=("parallel",),
            vmem_limit_bytes=_VMEM_LIMIT,
        ),
        cost_estimate=cost,
    )(w2d, b2d, xf)

    return out.reshape(N, 1, D, H, W)


if __name__ == "__main__":
    # Module defaults: feature_dims = 64 * 3 = 192 input channels, 1 output channel.
    N, C, D, H, W = 2, 192, 4, 8, 8

    key = jax.random.PRNGKey(0)
    kx, kw = jax.random.split(key)

    x = jax.random.normal(kx, (N, C, D, H, W), dtype=jnp.float32)

    # Deterministic parameter init mirroring nn.init.kaiming_normal_ on the
    # Conv3d weight (fan_in = C * 1 * 1 * 1, gain = sqrt(2)) and zero bias.
    fan_in = C
    std = math.sqrt(2.0 / fan_in)
    weight = jax.random.normal(kw, (1, C, 1, 1, 1), dtype=jnp.float32) * std
    bias = jnp.zeros((1,), dtype=jnp.float32)

    out = fusenet_forward(x, weight, bias)
    out = jax.block_until_ready(out)

    # Reference check (plain JAX) of the 1x1x1 conv semantics.
    ref = jnp.einsum("ncdhw,c->ndhw", x, weight.reshape(C)) + bias[0]
    ref = ref[:, None, :, :, :]
    assert out.shape == (N, 1, D, H, W)
    assert jnp.allclose(out, ref, atol=1e-4, rtol=1e-4)

    print("KERNEL_OK")
</pallas_src>

<mosaic_0001>
module attributes {stable_mosaic.version = 11 : i64} {
  func.func @fuse_kernel(%arg0: i32, %arg1: memref<1x192xf32, #tpu.memory_space<vmem>>, %arg2: memref<1x1xf32, #tpu.memory_space<smem>>, %arg3: memref<2x192x128xf32, #tpu.memory_space<vmem>>, %arg4: memref<2x128xf32, #tpu.memory_space<vmem>>) attributes {dimension_semantics = [#tpu.dimension_semantics<parallel>], iteration_bounds = array<i64: 2>, scalar_prefetch = 0 : i64, scratch_operands = 0 : i64, tpu.core_type = #tpu.core_type<tc>, window_params = [{pipeline_mode = #tpu.pipeline_mode<synchronous>, transform_indices = @transform_0, window_bounds = array<i64: 1, 192>}, {transform_indices = @transform_1, window_bounds = array<i64: 1, 1>}, {transform_indices = @transform_2, window_bounds = array<i64: 2, 192, 128>}, {transform_indices = @transform_3, window_bounds = array<i64: 2, 128>}]} {
    %c0 = arith.constant 0 : index
    %c0_0 = arith.constant 0 : index
    %0 = vector.load %arg1[%c0, %c0_0] : memref<1x192xf32, #tpu.memory_space<vmem>>, vector<1x192xf32>
    %c0_1 = arith.constant 0 : index
    %c0_2 = arith.constant 0 : index
    %1 = memref.load %arg2[%c0_1, %c0_2] : memref<1x1xf32, #tpu.memory_space<smem>>
    %c0_3 = arith.constant 0 : index
    %c0_4 = arith.constant 0 : index
    %c0_5 = arith.constant 0 : index
    %2 = vector.load %arg3[%c0_3, %c0_4, %c0_5] : memref<2x192x128xf32, #tpu.memory_space<vmem>>, vector<1x192x128xf32>
    %3 = vector.shape_cast %2 : vector<1x192x128xf32> to vector<192x128xf32>
    %cst = arith.constant dense<0.000000e+00> : vector<1x128xf32>
    %4 = tpu.matmul %0, %3, %cst {dimension_numbers = #tpu.dot_dimension_numbers<[1], [0], [0], [1], [0, 0, 1, 1], [], []>} : vector<1x192xf32>, vector<192x128xf32>, vector<1x128xf32> -> vector<1x128xf32>
    %5 = vector.broadcast %1 : f32 to vector<1x128xf32>
    %6 = arith.addf %4, %5 : vector<1x128xf32>
    %c0_6 = arith.constant 0 : index
    %c0_7 = arith.constant 0 : index
    %7 = vector.load %arg4[%c0_6, %c0_7] : memref<2x128xf32, #tpu.memory_space<vmem>>, vector<1x128xf32>
    tpu.vector_store %arg4[%c0_6, %c0_7], %6 {strides = array<i32>} : memref<2x128xf32, #tpu.memory_space<vmem>>, vector<1x128xf32>,
    %c1 = arith.constant 1 : index
    %c0_8 = arith.constant 0 : index
    %c0_9 = arith.constant 0 : index
    %8 = vector.load %arg3[%c1, %c0_8, %c0_9] : memref<2x192x128xf32, #tpu.memory_space<vmem>>, vector<1x192x128xf32>
    %9 = vector.shape_cast %8 : vector<1x192x128xf32> to vector<192x128xf32>
    %cst_10 = arith.constant dense<0.000000e+00> : vector<1x128xf32>
    %10 = tpu.matmul %0, %9, %cst_10 {dimension_numbers = #tpu.dot_dimension_numbers<[1], [0], [0], [1], [0, 0, 1, 1], [], []>} : vector<1x192xf32>, vector<192x128xf32>, vector<1x128xf32> -> vector<1x128xf32>
    %11 = vector.broadcast %1 : f32 to vector<1x128xf32>
    %12 = arith.addf %10, %11 : vector<1x128xf32>
    %c1_11 = arith.constant 1 : index
    %c0_12 = arith.constant 0 : index
    %13 = vector.load %arg4[%c1_11, %c0_12] : memref<2x128xf32, #tpu.memory_space<vmem>>, vector<1x128xf32>
    tpu.vector_store %arg4[%c1_11, %c0_12], %12 {strides = array<i32>} : memref<2x128xf32, #tpu.memory_space<vmem>>, vector<1x128xf32>,
    return
  }
  func.func @transform_0(%arg0: i32) -> (i32, i32) {
    %c0_i32 = arith.constant 0 : i32
    %c0_i32_0 = arith.constant 0 : i32
    %c0_i32_1 = arith.constant 0 : i32
    return %c0_i32, %c0_i32_0 : i32, i32
  }
  func.func @transform_1(%arg0: i32) -> (i32, i32) {
    %c0_i32 = arith.constant 0 : i32
    %c0_i32_0 = arith.constant 0 : i32
    %c0_i32_1 = arith.constant 0 : i32
    return %c0_i32, %c0_i32_0 : i32, i32
  }
  func.func @transform_2(%arg0: i32) -> (i32, i32, i32) {
    %c0_i32 = arith.constant 0 : i32
    %c0_i32_0 = arith.constant 0 : i32
    %c0_i32_1 = arith.constant 0 : i32
    return %c0_i32, %c0_i32_0, %arg0 : i32, i32, i32
  }
  func.func @transform_3(%arg0: i32) -> (i32, i32) {
    %c0_i32 = arith.constant 0 : i32
    %c0_i32_0 = arith.constant 0 : i32
    return %c0_i32, %arg0 : i32, i32
  }
}

</mosaic_0001>

<bundles_post_ra>
// kernel: tpu_custom_call.1
= control target key start
LH: loop header
LB: loop body
LE: loop exit
PB: predicated region body
PF: predicated region fallthrough
CT: control target
= control target key end

     0   :  { %s941_s0 = inlined_call_operand.vmem [shape: f32[1,192], index: 0, kind: input, shape index: {}]   ;;  %s942_s1 = inlined_call_operand.<no memory space> [shape: f32[1,1], index: 1, kind: input, shape index: {}]   ;;  %s943_s2 = inlined_call_operand.hbm [shape: f32[2,192,256], index: 2, kind: input, shape index: {}]   ;;  %s944_s3 = inlined_call_operand.hbm [shape: f32[2,256], index: 3, kind: output, shape index: {}]  }
   0x1   :  { %8 = sst [smem:[#allocation2]] %s942_s1 }
   0x2   :  { %9 = vsyncpa [#allocation4], 0 }
   0x3   :  { %11 = vsyncpa [#allocation4 + $0x1], 0 }
   0x4   :  { %12 = vsyncpa [#allocation5], 0 }
   0x5   :  { %14 = vsyncpa [#allocation5 + $0x1], 0  ;;  %s691_s14 = smov 0   ;;  %s693_s15 = smov 0  }
   0x6   :  { %s695_s16 = smov 0   ;;  %s697_s17 = smov 0  }
   0x7 LB: > { %s712_s1 = sadd.s32 4294967295, %s660_s17   ;;  %s480_s18 = sadd.s32 4294967294, %s660_s17   ;;  %s660_s17 = sphi %s697_s17, %s959_s17   ;;  %s656_s16 = sphi %s695_s16, %s958_s16   ;;  %s652_s15 = sphi %s693_s15, %s957_s15   ;;  %s648_s14 = sphi %s691_s14, %s956_s14  }
   0x8   : > { %s716_s19 = sadd.s32 1, %s660_s17   ;;  %s69_s20 = sadd.s32 1, %s656_s16 }
   0x9   : > { %s66_s21 = ssub.s32 %s660_s17, %s716_s19  ;;  %p76_p0 = scmp.ne.s32.totalorder %s656_s16, %s652_s15 }
   0xa   : > { %p67_p1 = scmp.eq.s32.totalorder %s66_s21, 0  ;;  %p77_p2 = scmp.eq.s32.totalorder %s660_s17, 0 }
   0xb   : > { %p82_p3 = scmp.ne.s32.totalorder %s652_s15, %s648_s14  ;;  %p83_p4 = scmp.eq.s32.totalorder %s712_s1, 0 }
   0xc   : > { %s728_s22 = scalar_select %p67_p1, %s656_s16, %s69_s20  }
   0xd   : > { %p78_p5 = por %p77_p2, %p76_p0  ;;  %p730_p6 = por %p83_p4, %p82_p3 }
   0xe   : > { %p106_p7 = scmp.eq.s32.totalorder %s712_s1, 1  ;;  %p112_p8 = scmp.eq.s32.totalorder %s480_s18, 1 }
   0xf   : > { %s947_s23 = scalar_select %p730_p6, 1, 0 }
  0x10   : > { %p530_p10 = scmp.lt.s32.totalorder %s660_s17, 2  ;;  %p737_p11 = por %p106_p7, %p76_p0 }
  0x11   : > { %p741_p12 = por %p112_p8, %p82_p3  ;;  %s138_s26 = sand.u32 1, %s656_s16  }
  0x12   : > { %s948_s24 = scalar_select %p737_p11, 1, 0 }
  0x13   : > { %s949_s25 = scalar_select %p741_p12, 1, 0 }
  0x14   : > { %s483_s27 = sshll.u32 %s660_s17, 7  ;;  %s516_s28 = smul.u32 384, %s138_s26 }
  0x15   : > { %s750_s4 = scalar_lea.hbm %s943_s2, %s483_s27  ;;  %p752_p13 = pnand %p530_p10, %p78_p5 }
  0x16   : > { %s142_s6 = scalar_lea.vmem [#allocation3], %s516_s28  ;;  %s759_s8 = scalar_lea.sflag [#allocation4], %s138_s26 }
  0x17   : > { %s148_s7 = sshll.u32 %s142_s6, 4  ;;  %s568_s9 = scalar_lea.hbm %s750_s4, 6144  ;;  %s756_s7 = int_to_ptr.vmem [resolvable:$true] %s148_s7 }
  0x18   : > { %p569_p1 = scmp.ne.s32.totalorder %s750_s4, %s568_s9  ;;  %p570_p2 = pneg %p752_p13 }
  0x19   : > { %s573_s12 = scalar_lea.hbm %s943_s2, 12288  ;;  %p574_p5 = scmp.lt.s32.totalorder %s750_s4, %s943_s2 }
  0x1a   : > { %p571_p3 = pnand %p570_p2, %p569_p1  ;;  %p575_p7 = scmp.lt.s32.totalorder %s573_s12, %s568_s9 }
  0x1c   : > { %p572_p4 = pneg %p571_p3  ;;  %p576_p8 = por %p575_p7, %p574_p5 }
  0x1e   : > { %p577_p10 = pnand %p576_p8, %p572_p4 }
  0x20   : > { %580 = shalt.err (!%p577_p10)
}
  0x21   : > { %s581_s20 = scalar_lea.vmem %s756_s7, 6144  ;;  %s662_s21 = smov [#allocation3]  }
  0x22   : > { %p582_p9 = scmp.ne.s32.totalorder %s756_s7, %s581_s20  ;;  %s586_s26 = sshll.u32 %s662_s21, 4  ;;  %s587_s26 = int_to_ptr.vmem [resolvable:$false] %s586_s26 }
  0x23   : > { %s588_s27 = scalar_lea.vmem %s587_s26, 12288  ;;  %p589_p3 = scmp.lt.s32.totalorder %s756_s7, %s587_s26 }
  0x24   : > { %p584_p0 = pnand %p582_p9, %p570_p2  ;;  %p590_p12 = scmp.lt.s32.totalorder %s588_s27, %s581_s20 }
  0x26   : > { %p585_p1 = pneg %p584_p0  ;;  %p591_p11 = por %p590_p12, %p589_p3 }
  0x28   : > { %p592_p6 = pnand %p591_p11, %p585_p1 }
  0x2a   : > { %595 = shalt.err (!%p592_p6)
}
  0x2b   : > { %s663_s28 = smov 256   ;;  %s664_s29 = smov 128  }
  0x2c   : > { %s665_s30 = smov 8   ;;  %p156_p9 = scmp.lt.s32.totalorder %s660_s17, 3 }
  0x2d   : > { %525 = dma.hbm_to_vmem [thread:$0]  (!%p752_p13), %s750_s4, 6144, %s756_s7, %s759_s8, %s663_s28, %s664_s29, %s665_s30  }
  0x2e   : > { %p951_p0 = scmp.ge.s32.totalorder %s660_s17, 1 }
  0x30   : > { %p157_p2 = pnand %p951_p0, %p156_p9 }
  0x31   : > { %s784_s6 = sand.u32 (!%p157_p2), 1, %s652_s15   ;;  %p952_p6 = scmp.ne.s32.totalorder (!%p157_p2), %s947_s23, 0 }
  0x32   : > { %160 = sbr.rel (%p157_p2) target bundleno = 314 (0x13a), region = 32  ;;  %s163_s10 = scalar_lea.sflag (!%p157_p2), [#allocation4], %s784_s6 }
  0x33   : > { %s517_s9 = smul.u32 (!%p157_p2), 384, %s784_s6 }
  0x35   : > { %s788_s11 = scalar_lea.vmem (!%p157_p2), [#allocation3], %s517_s9 }
  0x37   : > { %639 = dma.done.wait (%p952_p6), %s163_s10, 6144  }
  0x38   : > { %641 = vsyncadd (%p952_p6), %s163_s10, 4294961152  ;;  %v666_v0 = vmov 0.0   ;;  %v206_v1 = vld [vmem:[%s788_s11 + $0x78] sm:$0xff]  ;;  %v205_v3 = vld [vmem:[%s788_s11 + $0x70] sm:$0xff]  ;;  %v217_v35 = vlaneseq  ;;  %vm226_vm0 = vcmask 523264   ;;  %s190_s5 = sld [smem:[#allocation2]] }
  0x39   : > { %229 = vmatprep.subr.mxu0 %v666_v0  ;;  %325 = vmatprep.subr.mxu1 %v666_v0  ;;  %v502_v2 = vld [vmem:[%s788_s11 + $0x138] sm:$0xff]  ;;  %v501_v4 = vld [vmem:[%s788_s11 + $0x130] sm:$0xff]  ;;  %v204_v5 = vld [vmem:[%s788_s11 + $0x68] sm:$0xff]  ;;  %s485_s7 = sshll.u32 %s784_s6, 1  ;;  %s513_s8 = sshll.u32 %s712_s1, 5 }
  0x3a   : > { %230 = vmatpush1.msra.mxu0 %v206_v1  ;;  %326 = vmatpush1.msra.mxu1 %v502_v2  ;;  %v500_v6 = vld [vmem:[%s788_s11 + $0x128] sm:$0xff]  ;;  %v203_v7 = vld [vmem:[%s788_s11 + $0x60] sm:$0xff]  ;;  %v202_v9 = vld [vmem:[%s788_s11 + $0x58] sm:$0xff]  ;;  %v218_v40 = vshrl.u32 %v217_v35, 7  ;;  %s188_s12 = scalar_lea.vmem [#allocation6], %s485_s7  ;;  %s898_s21 = scalar_lea.hbm %s944_s3, %s513_s8 }
  0x3b   : > { %231 = vmatprep.subr.mxu0 %v666_v0  ;;  %327 = vmatprep.subr.mxu1 %v666_v0  ;;  %v499_v8 = vld [vmem:[%s788_s11 + $0x120] sm:$0xff]  ;;  %v498_v10 = vld [vmem:[%s788_s11 + $0x118] sm:$0xff]  ;;  %v201_v11 = vld [vmem:[%s788_s11 + $0x50] sm:$0xff]  ;;  %s410_s13 = sshll.u32 %s188_s12, 4  ;;  %s397_s1 = scalar_lea.sflag [#allocation5], %s784_s6  ;;  %s900_s13 = int_to_ptr.vmem [resolvable:$true] %s410_s13 }
  0x3c   : > { %232 = vmatpush1.msra.mxu0 %v205_v3  ;;  %328 = vmatpush1.msra.mxu1 %v501_v4  ;;  %v497_v12 = vld [vmem:[%s788_s11 + $0x110] sm:$0xff]  ;;  %v200_v13 = vld [vmem:[%s788_s11 + $0x48] sm:$0xff]  ;;  %v199_v15 = vld [vmem:[%s788_s11 + $0x40] sm:$0xff]  ;;  %v223_v45 = vsub.s32 1, %v218_v40  ;;  %v219_v49 = vsub.s32 0, %v218_v40  ;;  %s596_s26 = scalar_lea.vmem %s900_s13, 32 }
  0x3d   : > { %233 = vmatprep.subr.mxu0 %v666_v0  ;;  %329 = vmatprep.subr.mxu1 %v666_v0  ;;  %v496_v14 = vld [vmem:[%s788_s11 + $0x108] sm:$0xff]  ;;  %v495_v16 = vld [vmem:[%s788_s11 + $0x100] sm:$0xff]  ;;  %v198_v17 = vld [vmem:[%s788_s11 + $0x38] sm:$0xff]  ;;  %p597_p11 = scmp.ne.s32.totalorder %s900_s13, %s596_s26  ;;  %p953_p12 = scmp.ne.s32.totalorder %s948_s24, 0 }
  0x3e   : > { %234 = vmatpush1.msra.mxu0 %v204_v5  ;;  %330 = vmatpush1.msra.mxu1 %v500_v6  ;;  %v494_v18 = vld [vmem:[%s788_s11 + $0xf8] sm:$0xff]  ;;  %v197_v19 = vld [vmem:[%s788_s11 + $0x30] sm:$0xff]  ;;  %v196_v21 = vld [vmem:[%s788_s11 + $0x28] sm:$0xff]  ;;  %v215_v56 = vstv %s190_s5  ;;  %s667_s27 = smov [#allocation6]  }
  0x3f   : > { %235 = vmatprep.subr.mxu0 %v666_v0  ;;  %331 = vmatprep.subr.mxu1 %v666_v0  ;;  %v493_v20 = vld [vmem:[%s788_s11 + $0xf0] sm:$0xff]  ;;  %v492_v22 = vld [vmem:[%s788_s11 + $0xe8] sm:$0xff]  ;;  %v195_v23 = vld [vmem:[%s788_s11 + $0x20] sm:$0xff]  ;;  %p598_p13 = pnand %p597_p11, %p953_p12  ;;  %s600_s28 = sshll.u32 %s667_s27, 4  ;;  %s601_s28 = int_to_ptr.vmem [resolvable:$false] %s600_s28 }
  0x40   : > { %236 = vmatpush1.msra.mxu0 %v203_v7  ;;  %332 = vmatpush1.msra.mxu1 %v499_v8  ;;  %v491_v24 = vld [vmem:[%s788_s11 + $0xe0] sm:$0xff]  ;;  %v194_v25 = vld [vmem:[%s788_s11 + $0x18] sm:$0xff]  ;;  %v193_v27 = vld [vmem:[%s788_s11 + $0x10] sm:$0xff]  ;;  %s602_s29 = scalar_lea.vmem %s601_s28, 64  ;;  %p603_p5 = scmp.lt.s32.totalorder %s900_s13, %s601_s28 }
  0x41   : > { %237 = vmatprep.subr.mxu0 %v666_v0  ;;  %333 = vmatprep.subr.mxu1 %v666_v0  ;;  %v490_v26 = vld [vmem:[%s788_s11 + $0xd8] sm:$0xff]  ;;  %v489_v28 = vld [vmem:[%s788_s11 + $0xd0] sm:$0xff]  ;;  %v192_v29 = vld [vmem:[%s788_s11 + $0x8] sm:$0xff]  ;;  %p599_p4 = pneg %p598_p13  ;;  %p604_p7 = scmp.lt.s32.totalorder %s602_s29, %s596_s26 }
  0x42   : > { %238 = vmatpush1.msra.mxu0 %v202_v9  ;;  %334 = vmatpush1.msra.mxu1 %v498_v10  ;;  %v488_v30 = vld [vmem:[%s788_s11 + $0xc8] sm:$0xff]  ;;  %v191_v31 = vld [vmem:[%s788_s11] sm:$0xff]  ;;  %v214_v33 = vld [vmem:[%s788_s11 + $0xb8] sm:$0xff] }
  0x43   : > { %239 = vmatprep.subr.mxu0 %v666_v0  ;;  %335 = vmatprep.subr.mxu1 %v666_v0  ;;  %v487_v32 = vld [vmem:[%s788_s11 + $0xc0] sm:$0xff]  ;;  %v510_v34 = vld [vmem:[%s788_s11 + $0x178] sm:$0xff]  ;;  %v213_v36 = vld [vmem:[%s788_s11 + $0xb0] sm:$0xff]  ;;  %p605_p8 = por %p604_p7, %p603_p5 }
  0x44   : > { %240 = vmatpush1.msra.mxu0 %v201_v11  ;;  %336 = vmatpush1.msra.mxu1 %v497_v12  ;;  %v509_v37 = vld [vmem:[%s788_s11 + $0x170] sm:$0xff]  ;;  %v212_v38 = vld [vmem:[%s788_s11 + $0xa8] sm:$0xff]  ;;  %v211_v41 = vld [vmem:[%s788_s11 + $0xa0] sm:$0xff] }
  0x45   : > { %241 = vmatprep.subr.mxu0 %v666_v0  ;;  %337 = vmatprep.subr.mxu1 %v666_v0  ;;  %v508_v39 = vld [vmem:[%s788_s11 + $0x168] sm:$0xff]  ;;  %v507_v42 = vld [vmem:[%s788_s11 + $0x160] sm:$0xff]  ;;  %v210_v43 = vld [vmem:[%s788_s11 + $0x98] sm:$0xff]  ;;  %p606_p10 = pnand %p605_p8, %p599_p4 }
  0x46   : > { %242 = vmatpush1.msra.mxu0 %v200_v13  ;;  %338 = vmatpush1.msra.mxu1 %v496_v14  ;;  %v506_v44 = vld [vmem:[%s788_s11 + $0x158] sm:$0xff]  ;;  %v209_v46 = vld [vmem:[%s788_s11 + $0x90] sm:$0xff]  ;;  %v189_v48 = vld [vmem:[%s941_s0] sm:$0x3] }
  0x47   : > { %243 = vmatprep.subr.mxu0 %v666_v0  ;;  %339 = vmatprep.subr.mxu1 %v666_v0  ;;  %v505_v47 = vld [vmem:[%s788_s11 + $0x150] sm:$0xff]  ;;  %v208_v50 = vld [vmem:[%s788_s11 + $0x88] sm:$0xff]  ;;  %v224_v52 = vrot.slane %v189_v48, %v223_v45  ;;  %v207_v53 = vld [vmem:[%s788_s11 + $0x80] sm:$0xff]  ;;  %v220_v54 = vrot.slane %v189_v48, %v219_v49 }
  0x48   : > { %244 = vmatpush1.msra.mxu0 %v199_v15  ;;  %340 = vmatpush1.msra.mxu1 %v495_v16  ;;  %v504_v51 = vld [vmem:[%s788_s11 + $0x148] sm:$0xff]  ;;  %v503_v55 = vld [vmem:[%s788_s11 + $0x140] sm:$0xff] }
  0x49   : > { %245 = vmatprep.subr.mxu0 %v666_v0  ;;  %341 = vmatprep.subr.mxu1 %v666_v0 }
  0x4a   : > { %246 = vmatpush1.msra.mxu0 %v198_v17  ;;  %342 = vmatpush1.msra.mxu1 %v494_v18 }
  0x4b   : > { %247 = vmatprep.subr.mxu0 %v666_v0  ;;  %343 = vmatprep.subr.mxu1 %v666_v0 }
  0x4c   : > { %248 = vmatpush1.msra.mxu0 %v197_v19  ;;  %344 = vmatpush1.msra.mxu1 %v493_v20 }
  0x4d   : > { %249 = vmatprep.subr.mxu0 %v666_v0  ;;  %345 = vmatprep.subr.mxu1 %v666_v0 }
  0x4e   : > { %250 = vmatpush1.msra.mxu0 %v196_v21  ;;  %346 = vmatpush1.msra.mxu1 %v492_v22 }
  0x4f   : > { %251 = vmatprep.subr.mxu0 %v666_v0  ;;  %347 = vmatprep.subr.mxu1 %v666_v0 }
  0x50   : > { %252 = vmatpush1.msra.mxu0 %v195_v23  ;;  %348 = vmatpush1.msra.mxu1 %v491_v24 }
  0x51   : > { %253 = vmatprep.subr.mxu0 %v666_v0  ;;  %349 = vmatprep.subr.mxu1 %v666_v0 }
  0x52   : > { %254 = vmatpush1.msra.mxu0 %v194_v25  ;;  %350 = vmatpush1.msra.mxu1 %v490_v26 }
  0x53   : > { %255 = vmatprep.subr.mxu0 %v666_v0  ;;  %351 = vmatprep.subr.mxu1 %v666_v0 }
  0x54   : > { %256 = vmatpush1.msra.mxu0 %v193_v27  ;;  %352 = vmatpush1.msra.mxu1 %v489_v28 }
  0x55   : > { %257 = vmatprep.subr.mxu0 %v666_v0  ;;  %353 = vmatprep.subr.mxu1 %v666_v0 }
  0x56   : > { %258 = vmatpush1.msra.mxu0 %v192_v29  ;;  %354 = vmatpush1.msra.mxu1 %v488_v30 }
  0x57   : > { %259 = vmatprep.subr.mxu0 %v666_v0  ;;  %355 = vmatprep.subr.mxu1 %v666_v0 }
  0x58   : > { %260 = vmatpush1.msra.mxu0 %v191_v31  ;;  %356 = vmatpush1.msra.mxu1 %v487_v32 }
  0x59   : > { %277 = vmatprep.subr.mxu0 %v666_v0  ;;  %373 = vmatprep.subr.mxu1 %v666_v0 }
  0x5a   : > { %278 = vmatpush2.msra.mxu0 %v214_v33  ;;  %374 = vmatpush2.msra.mxu1 %v510_v34 }
  0x5b   : > { %279 = vmatprep.subr.mxu0 %v666_v0  ;;  %375 = vmatprep.subr.mxu1 %v666_v0 }
  0x5c   : > { %280 = vmatpush2.msra.mxu0 %v213_v36  ;;  %376 = vmatpush2.msra.mxu1 %v509_v37 }
  0x5d   : > { %281 = vmatprep.subr.mxu0 %v666_v0  ;;  %377 = vmatprep.subr.mxu1 %v666_v0 }
  0x5e   : > { %282 = vmatpush2.msra.mxu0 %v212_v38  ;;  %378 = vmatpush2.msra.mxu1 %v508_v39 }
  0x5f   : > { %283 = vmatprep.subr.mxu0 %v666_v0  ;;  %379 = vmatprep.subr.mxu1 %v666_v0 }
  0x60   : > { %284 = vmatpush2.msra.mxu0 %v211_v41  ;;  %380 = vmatpush2.msra.mxu1 %v507_v42 }
  0x61   : > { %285 = vmatprep.subr.mxu0 %v666_v0  ;;  %381 = vmatprep.subr.mxu1 %v666_v0 }
  0x62   : > { %286 = vmatpush2.msra.mxu0 %v210_v43  ;;  %382 = vmatpush2.msra.mxu1 %v506_v44 }
  0x63   : > { %287 = vmatprep.subr.mxu0 %v666_v0  ;;  %383 = vmatprep.subr.mxu1 %v666_v0 }
  0x64   : > { %288 = vmatpush2.msra.mxu0 %v209_v46  ;;  %384 = vmatpush2.msra.mxu1 %v505_v47 }
  0x65   : > { %289 = vmatprep.subr.mxu0 %v666_v0  ;;  %385 = vmatprep.subr.mxu1 %v666_v0 }
  0x66   : > { %290 = vmatpush2.msra.mxu0 %v208_v50  ;;  %386 = vmatpush2.msra.mxu1 %v504_v51 }
  0x67   : > { %291 = vmatprep.subr.mxu0 %v666_v0  ;;  %387 = vmatprep.subr.mxu1 %v666_v0 }
  0x68   : > { %292 = vmatpush2.msra.mxu0 %v207_v53  ;;  %486 = vmatprep.mubr.msk.f32.mxu0 %vm226_vm0, %v224_v52 }
  0x69   : > { %388 = vmatpush2.msra.mxu1 %v503_v55  ;;  %511 = vmatprep.mubr.msk.f32.mxu1 %vm226_vm0, %v224_v52 }
  0x6a   : > { %294 = vmatmul.mubr.f32.vlgmr.msra.gmra.mxu0 %v220_v54  ;;  %390 = vmatmul.mubr.f32.vlgmr.msra.gmra.mxu1 %v220_v54 }
 0x12a   : > { %v295_v57 = vpop.f32.mrf.mxu0  ;;  %v391_v58 = vpop.f32.mrf.mxu1 }
 0x12b   : > { %v296_v59 = vadd.f32 %v295_v57, %v215_v56  ;;  %v392_v60 = vadd.f32 %v391_v58, %v215_v56 }
 0x12c   : > { %v297_v61 = vpop.f32.mrf.mxu0  ;;  %v393_v62 = vpop.f32.mrf.mxu1 }
 0x12d   : > { %299 = vst [vmem:[%s188_s12] sm:$0x1] %v296_v59  ;;  %395 = vst [vmem:[%s188_s12 + $0x1] sm:$0x1] %v392_v60 }
 0x12e   : > { %609 = shalt.err (!%p606_p10)
}
 0x12f   : > { %s610_s30 = scalar_lea.hbm %s898_s21, 32  ;;  %s614_s10 = scalar_lea.hbm %s944_s3, 64 }
 0x130   : > { %p611_p1 = scmp.ne.s32.totalorder %s898_s21, %s610_s30  ;;  %p615_p0 = scmp.lt.s32.totalorder %s898_s21, %s944_s3 }
 0x131   : > { %p616_p2 = scmp.lt.s32.totalorder %s614_s10, %s610_s30 }
 0x132   : > { %p612_p3 = pnand %p611_p1, %p953_p12 }
 0x133   : > { %p617_p6 = por %p616_p2, %p615_p0 }
 0x134   : > { %p613_p9 = pneg %p612_p3 }
 0x136   : > { %p618_p11 = pnand %p617_p6, %p613_p9 }
 0x138   : > { %621 = shalt.err (!%p618_p11)
}
 0x139   : > { %520 = dma.vmem_to_hbm [thread:$0]  (%p953_p12), %s900_s13, 32, %s898_s21, %s397_s1  }
 0x13a PF: > { %s422_s4 = sand.u32 1, %s648_s14   ;;  %p954_p13 = scmp.ne.s32.totalorder %s949_s25, 0 }
 0x13b   : > { %p955_p4 = scmp.ge.s32.totalorder %s660_s17, 2  ;;  %s423_s5 = scalar_lea.sflag [#allocation5], %s422_s4 }
 0x13d   : > { %p527_p5 = pnand %p955_p4, %p954_p13 }
 0x13f   : > { %p528_p7 = pneg %p527_p5 }
 0x141   : > { %643 = dma.done.wait (%p528_p7), %s423_s5, 32  }
 0x142   : > { %645 = vsyncadd (%p528_p7), %s423_s5, 4294967264  ;;  %p17_p8 = scmp.ge.s32.totalorder %s716_s19, 4   ;;  %s956_s14 = smov %s652_s15 }
 0x143   : > { %s957_s15 = smov %s656_s16  ;;  %s958_s16 = smov %s728_s22 }
 0x144   : > { %s959_s17 = smov %s716_s19  ;;  %19 = sbr.rel (!%p17_p8) target bundleno = 7 (0x7), region = 78 }
 0x149   :  { %428 = vsyncpa [#allocation4], 1 }
 0x14a   :  { %430 = vsyncpa [#allocation4 + $0x1], 1 }
 0x14b   :  { %431 = vsyncpa [#allocation5], 1 }
 0x14c   :  { %433 = vsyncpa [#allocation5 + $0x1], 1 }

</bundles_post_ra>
